<compile_context>
chip_gen: v7x
topology: tpu7x:2x2x1
jax: 0.10.0
libtpu: 0.0.40
codegen_flags: <defaults>
</compile_context>

<pallas_src>
import math

import jax
import jax.numpy as jnp
from jax.experimental import pallas as pl
from jax.experimental.pallas import tpu as pltpu


# ----------------------------------------------------------------------------- utils
def _round_up(a, b):
    return (a + b - 1) // b * b


def _layernorm(x, g, b, eps=1e-6):
    mean = jnp.mean(x, axis=-1, keepdims=True)
    var = jnp.mean(jnp.square(x - mean), axis=-1, keepdims=True)
    return (x - mean) * jax.lax.rsqrt(var + eps) * g + b


def _pad_rows(a, n_rows):
    pad = n_rows - a.shape[0]
    if pad == 0:
        return a
    return jnp.concatenate([a, jnp.zeros((pad,) + a.shape[1:], a.dtype)], axis=0)


def _vmem_budget_bytes():
    """Per-generation VMEM budget: headroom on v7x (64 MiB/TC), roomier on v5e/v6e."""
    try:
        cap = int(pltpu.get_tpu_info().vmem_capacity_bytes)
    except Exception:  # not on TPU / API drift -> conservative default
        cap = 64 * 1024 * 1024
    return min(cap * 3 // 4, 100 * 1024 * 1024)


# ----------------------------------------------------------------------------- kernels
def pool_kernel(x_ref, coords_ref, vid_row_ref, w_pre_ref, lnp_g_ref, lnp_b_ref,
                w_pos_ref, pooled_ref, acc_ref):
    """Per row-tile: pre_mix + positional weights, then accumulate per-voxel means of
    fw = [f*cos, f*sin, f*pos] via an on-the-fly bf16 one-hot matmul.
    Grid = (core_split, row_tiles); the row-tile axis carries the accumulator."""
    j = pl.program_id(1)

    @pl.when(j == 0)
    def _():
        acc_ref[...] = jnp.zeros_like(acc_ref)

    # pre_mix: Linear(C -> C, bias=False) + LayerNorm(eps=1e-6)
    f = jnp.dot(x_ref[...], w_pre_ref[...], preferred_element_type=jnp.float32)
    f = _layernorm(f, lnp_g_ref[...], lnp_b_ref[...])

    # pos_weight (alpha folded into w_pos by the wrapper).  Lane 3 of the coords block
    # holds 1/voxel_count (w_pos rows >= 3 are zero so it does not perturb pos).
    pos = jnp.dot(coords_ref[...], w_pos_ref[...], preferred_element_type=jnp.float32)
    inv_cnt = coords_ref[:, 3:4]                                          # (tm, 1)
    fw = jnp.concatenate([f * jnp.cos(pos), f * jnp.sin(pos), f * pos],
                         axis=-1) * inv_cnt                               # (tm, 3C)

    tm = f.shape[0]
    v_pad = acc_ref.shape[0]
    vid_row = vid_row_ref[0]                                              # (1, tm) int32
    # exact in bf16; bf16 operands + f32 accumulate -> native MXU rate
    onehot_t = (jax.lax.broadcasted_iota(jnp.int32, (v_pad, tm), 0) == vid_row
                ).astype(jnp.bfloat16)                                    # (v_pad, tm)
    acc_ref[...] += jnp.dot(onehot_t, fw.astype(jnp.bfloat16),
                            preferred_element_type=jnp.float32)

    @pl.when(j == pl.num_programs(1) - 1)
    def _():
        pooled_ref[...] = acc_ref[...]                                    # per-core partial means


def combine_kernel(x_ref, coords_ref, vid_col_ref, pooled_ref, nbr_ref,
                   w_pre_ref, lnp_g_ref, lnp_b_ref, w_pos_ref, w_conv_ref,
                   ln_g_ref, ln_b_ref, lnl_g_ref, lnl_b_ref, o_ref):
    """Per row-tile: recompute f/pos (cheaper than an HBM round trip), gather pooled
    voxel means back (bf16 one-hot matmul), recombine with sin/cos/linear weights,
    add the LayerNormed 3x3x3 sparse-conv branch, ReLU."""
    f = jnp.dot(x_ref[...], w_pre_ref[...], preferred_element_type=jnp.float32)
    f = _layernorm(f, lnp_g_ref[...], lnp_b_ref[...])
    pos = jnp.dot(coords_ref[...], w_pos_ref[...], preferred_element_type=jnp.float32)
    psin, pcos = jnp.sin(pos), jnp.cos(pos)

    tm, C = f.shape
    v_pad = pooled_ref.shape[0]
    onehot = (vid_col_ref[...] ==
              jax.lax.broadcasted_iota(jnp.int32, (tm, v_pad), 1)).astype(jnp.bfloat16)
    p = jnp.dot(onehot, pooled_ref[...], preferred_element_type=jnp.float32)  # (tm, 3C)

    new = p[:, :C] * pcos + p[:, C:2 * C] * psin + (p[:, 2 * C:] - f * pos)
    new = _layernorm(new, ln_g_ref[...], ln_b_ref[...])

    # local_mix: 3x3x3 sparse conv == gathered-neighbour feats (bf16) @ (27C, C) bf16
    local = jnp.dot(nbr_ref[...], w_conv_ref[...], preferred_element_type=jnp.float32)
    local = _layernorm(local, lnl_g_ref[...], lnl_b_ref[...])

    o_ref[...] = jnp.maximum(new + local, 0.0)


# ----------------------------------------------------------------------------- glue (index building only)
def _voxel_ids(coords, s):
    """Dense-rank id of each point's (x//s, y//s, z//s, batch) voxel.  O(N log N).
    TODO(synk): linearized keys are int32; use int64 / per-batch sorting for very
    large coordinate ranges to avoid overflow."""
    vkey = jnp.concatenate([coords[:, :3] // s, coords[:, 3:4]], axis=1).astype(jnp.int32)
    radix = jnp.max(vkey, axis=0) + 2
    lin = ((vkey[:, 0] * radix[1] + vkey[:, 1]) * radix[2] + vkey[:, 2]) * radix[3] + vkey[:, 3]
    order = jnp.argsort(lin)
    sorted_lin = lin[order]
    is_new = jnp.concatenate([jnp.ones((1,), jnp.bool_), sorted_lin[1:] != sorted_lin[:-1]])
    rank_sorted = jnp.cumsum(is_new.astype(jnp.int32)) - 1
    return jnp.zeros_like(lin).at[order].set(rank_sorted).astype(jnp.int32)


def _build_neighbor_idx(coords):
    """idx[n, k] = index of the point at coords[n] + offset_k (same batch), or N if
    absent.  Sort + searchsorted: O(27 N log N)."""
    N = coords.shape[0]
    c = coords.astype(jnp.int32)
    radix = jnp.max(c, axis=0) + 3                      # room for the +-1 offset and +1 shift
    shift = jnp.array([1, 1, 1, 0], jnp.int32)

    def lin4(q):
        return ((q[..., 0] * radix[1] + q[..., 1]) * radix[2] + q[..., 2]) * radix[3] + q[..., 3]

    base = lin4(c + shift)
    order = jnp.argsort(base)
    sorted_key = base[order]

    d = jnp.arange(-1, 2, dtype=jnp.int32)
    offs = jnp.stack(jnp.meshgrid(d, d, d, indexing="ij"), axis=-1).reshape(-1, 3)
    off4 = jnp.concatenate([offs, jnp.zeros((27, 1), jnp.int32)], axis=1)    # (27, 4)
    tkey = lin4(c[None, :, :] + off4[:, None, :] + shift)                    # (27, N)
    posn = jnp.clip(jnp.searchsorted(sorted_key, tkey), 0, N - 1)
    found = sorted_key[posn] == tkey
    idx = jnp.where(found, order[posn], N)                                   # N -> zero pad row
    return jnp.transpose(idx, (1, 0))                                        # (N, 27)


# ----------------------------------------------------------------------------- wrapper
def elk_block_pallas(feats, coords, params, s=4, r=4, tm=256, n_split=2, num_voxels=None):
    # TODO(synk): voxel_to_aux / aux_to_voxel (and the query scale `r`) are external
    # to the module; modeled as a scatter-mean over scale-s voxels gathered back to
    # the source points (r treated as s).
    # TODO(synk): neighbour-row gather for the sparse conv is still JAX glue (27x HBM
    # stream); an in-kernel DMA gather (scalar-prefetched index table, feats in
    # pl.ANY) would drop it, but per-row DMAs are not yet worth the descriptor cost.
    N, C = feats.shape
    tm = max(8, min(tm, _round_up(N, 8)))               # 256 fills the v6e/v7x MXU K-dim
    assert tm % 8 == 0
    n_tiles = (N + tm - 1) // tm
    n_split = max(1, n_split)                           # leading "parallel" axis (megacore)
    n_half = (n_tiles + n_split - 1) // n_split
    total_tiles = n_split * n_half
    n_pad = total_tiles * tm

    # ---- index-building glue (O(N log N)) ----
    vid = _voxel_ids(coords, s)                                            # (N,)
    if num_voxels is None:
        # eager-only; pass a static bound when jitting the wrapper.
        num_voxels = int(jnp.max(vid)) + 1
    v_pad = _round_up(max(num_voxels, 8), 8)                               # tight voxel bound
    counts = jnp.zeros((v_pad,), jnp.float32).at[vid].add(1.0)
    inv_row = (1.0 / jnp.maximum(counts, 1.0))[vid]                        # (N,) per-point 1/cnt

    nbr_idx = _build_neighbor_idx(coords)                                  # (N, 27)
    feats_z = jnp.concatenate([feats, jnp.zeros((1, C), feats.dtype)], axis=0)
    nbr = feats_z[nbr_idx].reshape(N, 27 * C).astype(jnp.bfloat16)

    # coords block: lanes 0..2 = xyz, lane 3 = 1/voxel_count (w_pos rows >=3 are zero)
    coords_f = jnp.zeros((N, 8), jnp.float32)
    coords_f = coords_f.at[:, :3].set(coords[:, :3].astype(jnp.float32))
    coords_f = coords_f.at[:, 3].set(inv_row)

    # ---- row padding (padded rows: inv_cnt = 0 AND sentinel voxel id >= v_pad) ----
    x_p = _pad_rows(feats, n_pad)
    coords_p = _pad_rows(coords_f, n_pad)
    nbr_p = _pad_rows(nbr, n_pad)
    vid_p = jnp.concatenate([vid, jnp.full((n_pad - N,), v_pad, jnp.int32)])
    vid_col = vid_p[:, None]                                               # (n_pad, 1)
    vid_row = vid_p.reshape(total_tiles, 1, tm)                            # (tiles, 1, tm)

    # fold alpha into pos_weight; pad the 3 input rows to 8 (rows 3..7 zero)
    w_pos = jnp.zeros((8, C), jnp.float32).at[:3, :].set(params["w_pos3"] * params["alpha"])
    w_conv = params["w_conv"].astype(jnp.bfloat16)

    vmem_budget = _vmem_budget_bytes()

    # ---- phase 1: pointwise math + per-voxel mean accumulation (split over cores) ----
    row2 = lambda last: pl.BlockSpec((tm, last), lambda c, j: (c * n_half + j, 0))
    full2 = lambda r_, c_: pl.BlockSpec((r_, c_), lambda c, j: (0, 0))

    pooled_parts = pl.pallas_call(
        pool_kernel,
        grid=(n_split, n_half),
        in_specs=[
            row2(C),                                                # feats tile
            row2(8),                                                # coords + inv_cnt tile
            pl.BlockSpec((1, 1, tm), lambda c, j: (c * n_half + j, 0, 0)),  # voxel ids (row)
            full2(C, C),                                            # w_pre
            full2(1, C), full2(1, C),                               # pre_mix LayerNorm
            full2(8, C),                                            # w_pos (alpha folded)
        ],
        out_specs=pl.BlockSpec((None, v_pad, 3 * C), lambda c, j: (c, 0, 0)),
        out_shape=jax.ShapeDtypeStruct((n_split, v_pad, 3 * C), jnp.float32),
        scratch_shapes=[pltpu.VMEM((v_pad, 3 * C), jnp.float32)],
        compiler_params=pltpu.CompilerParams(
            dimension_semantics=("parallel", "arbitrary"),
            vmem_limit_bytes=vmem_budget),
    )(x_p, coords_p, vid_row, params["w_pre"], params["lnp_g"], params["lnp_b"], w_pos)

    # reduce per-core partials (tiny); bf16 for the gather-back matmul in phase 2
    pooled = jnp.sum(pooled_parts, axis=0).astype(jnp.bfloat16)            # (v_pad, 3C)

    # ---- phase 2: gather-back + conv branch + norms + ReLU (parallel over row tiles) ----
    row = lambda last: pl.BlockSpec((tm, last), lambda i: (i, 0))
    full = lambda r_, c_: pl.BlockSpec((r_, c_), lambda i: (0, 0))

    out = pl.pallas_call(
        combine_kernel,
        grid=(total_tiles,),
        in_specs=[
            row(C), row(8),                                         # feats, coords(+inv)
            pl.BlockSpec((tm, 1), lambda i: (i, 0)),                # voxel ids (col layout)
            full(v_pad, 3 * C),                                     # pooled means (bf16, resident)
            row(27 * C),                                            # neighbour feats (bf16)
            full(C, C), full(1, C), full(1, C), full(8, C),         # pre_mix / pos weights
            full(27 * C, C),                                        # conv weight (bf16)
            full(1, C), full(1, C), full(1, C), full(1, C),         # norm / norm_local
        ],
        out_specs=row(C),
        out_shape=jax.ShapeDtypeStruct((n_pad, C), jnp.float32),
        compiler_params=pltpu.CompilerParams(
            dimension_semantics=("parallel",),
            vmem_limit_bytes=vmem_budget),
    )(x_p, coords_p, vid_col, pooled, nbr_p,
      params["w_pre"], params["lnp_g"], params["lnp_b"], w_pos, w_conv,
      params["ln_g"], params["ln_b"], params["lnl_g"], params["lnl_b"])

    return out[:N]


# ----------------------------------------------------------------------------- reference
def elk_block_reference(feats, coords, params, s=4, r=4):
    """Pure-JAX f32 reference for correctness checking (scatter-based voxel mean)."""
    N, C = feats.shape
    nbr_idx = _build_neighbor_idx(coords)
    feats_z = jnp.concatenate([feats, jnp.zeros((1, C), feats.dtype)], axis=0)
    nbr = feats_z[nbr_idx].reshape(N, 27 * C)

    f = _layernorm(feats @ params["w_pre"], params["lnp_g"], params["lnp_b"])
    pos = (coords[:, :3].astype(jnp.float32) @ params["w_pos3"]) * params["alpha"]
    psin, pcos = jnp.sin(pos), jnp.cos(pos)
    fw_cos, fw_sin, fw_lin = f * pcos, f * psin, f * pos

    vid = _voxel_ids(coords, s)

    def voxel_mean(x):
        sums = jnp.zeros((N, x.shape[1]), x.dtype).at[vid].add(x)
        cnt = jnp.zeros((N, 1), x.dtype).at[vid].add(1.0)
        return (sums / jnp.maximum(cnt, 1.0))[vid]

    new = voxel_mean(fw_cos) * pcos + voxel_mean(fw_sin) * psin + (voxel_mean(fw_lin) - fw_lin)
    new = _layernorm(new, params["ln_g"], params["ln_b"])
    local = _layernorm(nbr @ params["w_conv"], params["lnl_g"], params["lnl_b"])
    return jnp.maximum(new + local, 0.0)


def make_params(key, C):
    k1, k2, k3 = jax.random.split(key, 3)
    return dict(
        w_pre=jax.random.normal(k1, (C, C), jnp.float32) / math.sqrt(C),   # pre_mix Linear
        lnp_g=jnp.ones((1, C), jnp.float32),                               # pre_mix LayerNorm
        lnp_b=jnp.zeros((1, C), jnp.float32),
        w_pos3=jax.random.normal(k2, (3, C), jnp.float32) / math.sqrt(3.0),  # pos_weight Linear
        alpha=jnp.ones((1, C), jnp.float32),                               # torch init: ones(1, inc)
        w_conv=jax.random.normal(k3, (27 * C, C), jnp.float32) / math.sqrt(27.0 * C),  # spnn.Conv3d
        ln_g=jnp.ones((1, C), jnp.float32),                                # self.norm
        ln_b=jnp.zeros((1, C), jnp.float32),
        lnl_g=jnp.ones((1, C), jnp.float32),                               # self.norm_local
        lnl_b=jnp.zeros((1, C), jnp.float32),
    )


if __name__ == "__main__":
    N_PER_B, B, C, GRID, S, R = 32, 2, 32, 16, 4, 4
    key = jax.random.PRNGKey(0)
    kf, kp, kc0, kc1 = jax.random.split(key, 4)
    # unique voxel coordinates per batch (sparse tensor requirement)
    coords_list = []
    for b, kb in enumerate([kc0, kc1]):
        lin = jax.random.permutation(kb, GRID ** 3)[:N_PER_B]
        x = lin // (GRID * GRID)
        y = (lin // GRID) % GRID
        z = lin % GRID
        coords_list.append(jnp.stack([x, y, z, jnp.full_like(x, b)], axis=1))
    coords = jnp.concatenate(coords_list, axis=0).astype(jnp.int32)        # (64, 4)
    feats = jax.random.normal(kf, (B * N_PER_B, C), jnp.float32)           # (64, 32)
    params = make_params(kp, C)

    # tm=24 exercises row padding, a >1-step accumulation loop, and the 2-way core split
    out = elk_block_pallas(feats, coords, params, s=S, r=R, tm=24, n_split=2)
    out = jax.block_until_ready(out)
    ref = elk_block_reference(feats, coords, params, s=S, r=R)

    assert out.shape == (B * N_PER_B, C)
    assert bool(jnp.all(jnp.isfinite(out)))
    err = float(jnp.max(jnp.abs(out - ref)))
    assert jnp.allclose(out, ref, atol=5e-2, rtol=5e-2), err
    print("KERNEL_OK")
</pallas_src>

<mosaic_0001>
module attributes {stable_mosaic.version = 11 : i64} {
  func.func @pool_kernel(%arg0: i32, %arg1: i32, %arg2: memref<24x32xf32, #tpu.memory_space<vmem>>, %arg3: memref<24x8xf32, #tpu.memory_space<vmem>>, %arg4: memref<1x1x24xi32, #tpu.memory_space<vmem>>, %arg5: memref<32x32xf32, #tpu.memory_space<vmem>>, %arg6: memref<1x32xf32, #tpu.memory_space<vmem>>, %arg7: memref<1x32xf32, #tpu.memory_space<vmem>>, %arg8: memref<8x32xf32, #tpu.memory_space<vmem>>, %arg9: memref<1x48x96xf32, #tpu.memory_space<vmem>>, %arg10: memref<48x96xf32, #tpu.memory_space<vmem>>) attributes {dimension_semantics = [#tpu.dimension_semantics<parallel>, #tpu.dimension_semantics<arbitrary>], iteration_bounds = array<i64: 2, 2>, scalar_prefetch = 0 : i64, scratch_operands = 1 : i64, tpu.core_type = #tpu.core_type<tc>, window_params = [{transform_indices = @transform_0, window_bounds = array<i64: 24, 32>}, {transform_indices = @transform_1, window_bounds = array<i64: 24, 8>}, {transform_indices = @transform_2, window_bounds = array<i64: 1, 1, 24>}, {pipeline_mode = #tpu.pipeline_mode<synchronous>, transform_indices = @transform_3, window_bounds = array<i64: 32, 32>}, {pipeline_mode = #tpu.pipeline_mode<synchronous>, transform_indices = @transform_4, window_bounds = array<i64: 1, 32>}, {pipeline_mode = #tpu.pipeline_mode<synchronous>, transform_indices = @transform_5, window_bounds = array<i64: 1, 32>}, {pipeline_mode = #tpu.pipeline_mode<synchronous>, transform_indices = @transform_6, window_bounds = array<i64: 8, 32>}, {transform_indices = @transform_7, window_bounds = array<i64: 1, 48, 96>}]} {
    %c0_i32 = arith.constant 0 : i32
    %0 = arith.cmpi eq, %arg1, %c0_i32 : i32
    %1 = arith.extui %0 : i1 to i32
    %c0_i32_0 = arith.constant 0 : i32
    %2 = arith.cmpi ne, %1, %c0_i32_0 : i32
    scf.if %2 {
      %cst_28 = arith.constant 0.000000e+00 : f32
      %58 = vector.broadcast %cst_28 : f32 to vector<48x96xf32>
      %c0_29 = arith.constant 0 : index
      %c0_30 = arith.constant 0 : index
      %59 = vector.load %arg10[%c0_29, %c0_30] : memref<48x96xf32, #tpu.memory_space<vmem>>, vector<48x96xf32>
      tpu.vector_store %arg10[%c0_29, %c0_30], %58 {strides = array<i32>} : memref<48x96xf32, #tpu.memory_space<vmem>>, vector<48x96xf32>,
    } else {
    }
    %c0 = arith.constant 0 : index
    %c0_1 = arith.constant 0 : index
    %3 = vector.load %arg2[%c0, %c0_1] : memref<24x32xf32, #tpu.memory_space<vmem>>, vector<24x32xf32>
    %c0_2 = arith.constant 0 : index
    %c0_3 = arith.constant 0 : index
    %4 = vector.load %arg5[%c0_2, %c0_3] : memref<32x32xf32, #tpu.memory_space<vmem>>, vector<32x32xf32>
    %cst = arith.constant dense<0.000000e+00> : vector<24x32xf32>
    %5 = tpu.matmul %3, %4, %cst {dimension_numbers = #tpu.dot_dimension_numbers<[1], [0], [0], [1], [0, 0, 1, 1], [], []>} : vector<24x32xf32>, vector<32x32xf32>, vector<24x32xf32> -> vector<24x32xf32>
    %c0_4 = arith.constant 0 : index
    %c0_5 = arith.constant 0 : index
    %6 = vector.load %arg6[%c0_4, %c0_5] : memref<1x32xf32, #tpu.memory_space<vmem>>, vector<1x32xf32>
    %c0_6 = arith.constant 0 : index
    %c0_7 = arith.constant 0 : index
    %7 = vector.load %arg7[%c0_6, %c0_7] : memref<1x32xf32, #tpu.memory_space<vmem>>, vector<1x32xf32>
    %cst_8 = arith.constant dense<0.000000e+00> : vector<24xf32>
    %8 = vector.multi_reduction <add>, %5, %cst_8 [1] : vector<24x32xf32> to vector<24xf32>
    %9 = vector.shape_cast %8 : vector<24xf32> to vector<24x1xf32>
    %cst_9 = arith.constant 3.200000e+01 : f32
    %10 = vector.broadcast %cst_9 : f32 to vector<24x1xf32>
    %11 = arith.divf %9, %10 : vector<24x1xf32>
    %12 = vector.broadcast %11 : vector<24x1xf32> to vector<24x32xf32>
    %13 = arith.subf %5, %12 : vector<24x32xf32>
    %14 = arith.mulf %13, %13 : vector<24x32xf32>
    %cst_10 = arith.constant dense<0.000000e+00> : vector<24xf32>
    %15 = vector.multi_reduction <add>, %14, %cst_10 [1] : vector<24x32xf32> to vector<24xf32>
    %16 = vector.shape_cast %15 : vector<24xf32> to vector<24x1xf32>
    %cst_11 = arith.constant 3.200000e+01 : f32
    %17 = vector.broadcast %cst_11 : f32 to vector<24x1xf32>
    %18 = arith.divf %16, %17 : vector<24x1xf32>
    %19 = vector.broadcast %11 : vector<24x1xf32> to vector<24x32xf32>
    %20 = arith.subf %5, %19 : vector<24x32xf32>
    %cst_12 = arith.constant 9.99999997E-7 : f32
    %21 = vector.broadcast %cst_12 : f32 to vector<24x1xf32>
    %22 = arith.addf %18, %21 : vector<24x1xf32>
    %23 = math.rsqrt %22 : vector<24x1xf32>
    %24 = vector.broadcast %23 : vector<24x1xf32> to vector<24x32xf32>
    %25 = arith.mulf %20, %24 : vector<24x32xf32>
    %26 = vector.broadcast %6 : vector<1x32xf32> to vector<24x32xf32>
    %27 = arith.mulf %25, %26 : vector<24x32xf32>
    %28 = vector.broadcast %7 : vector<1x32xf32> to vector<24x32xf32>
    %29 = arith.addf %27, %28 : vector<24x32xf32>
    %c0_13 = arith.constant 0 : index
    %c0_14 = arith.constant 0 : index
    %30 = vector.load %arg3[%c0_13, %c0_14] : memref<24x8xf32, #tpu.memory_space<vmem>>, vector<24x8xf32>
    %c0_15 = arith.constant 0 : index
    %c0_16 = arith.constant 0 : index
    %31 = vector.load %arg8[%c0_15, %c0_16] : memref<8x32xf32, #tpu.memory_space<vmem>>, vector<8x32xf32>
    %cst_17 = arith.constant dense<0.000000e+00> : vector<24x32xf32>
    %32 = tpu.matmul %30, %31, %cst_17 {dimension_numbers = #tpu.dot_dimension_numbers<[1], [0], [0], [1], [0, 0, 1, 1], [], []>} : vector<24x8xf32>, vector<8x32xf32>, vector<24x32xf32> -> vector<24x32xf32>
    %c0_18 = arith.constant 0 : index
    %c3 = arith.constant 3 : index
    %33 = vector.load %arg3[%c0_18, %c3] : memref<24x8xf32, #tpu.memory_space<vmem>>, vector<24x1xf32>
    %34 = math.cos %32 : vector<24x32xf32>
    %35 = arith.mulf %29, %34 : vector<24x32xf32>
    %36 = math.sin %32 : vector<24x32xf32>
    %37 = arith.mulf %29, %36 : vector<24x32xf32>
    %38 = arith.mulf %29, %32 : vector<24x32xf32>
    %39 = tpu.concatenate %35, %37, %38 in 1 : vector<24x32xf32>, vector<24x32xf32>, vector<24x32xf32> -> vector<24x96xf32>
    %40 = vector.broadcast %33 : vector<24x1xf32> to vector<24x96xf32>
    %41 = arith.mulf %39, %40 : vector<24x96xf32>
    %c0_19 = arith.constant 0 : index
    %c0_20 = arith.constant 0 : index
    %c0_21 = arith.constant 0 : index
    %42 = vector.load %arg4[%c0_19, %c0_20, %c0_21] : memref<1x1x24xi32, #tpu.memory_space<vmem>>, vector<1x1x24xi32>
    %43 = vector.shape_cast %42 : vector<1x1x24xi32> to vector<1x24xi32>
    %44 = tpu.iota {dimensions = array<i32: 0>} : vector<48x24xi32>
    %45 = vector.broadcast %43 : vector<1x24xi32> to vector<48x24xi32>
    %46 = arith.cmpi eq, %44, %45 : vector<48x24xi32>
    %47 = arith.extui %46 : vector<48x24xi1> to vector<48x24xi32>
    %48 = arith.sitofp %47 : vector<48x24xi32> to vector<48x24xf32>
    %49 = arith.truncf %48 : vector<48x24xf32> to vector<48x24xbf16>
    %c0_22 = arith.constant 0 : index
    %c0_23 = arith.constant 0 : index
    %50 = vector.load %arg10[%c0_22, %c0_23] : memref<48x96xf32, #tpu.memory_space<vmem>>, vector<48x96xf32>
    %51 = arith.truncf %41 : vector<24x96xf32> to vector<24x96xbf16>
    %cst_24 = arith.constant dense<0.000000e+00> : vector<48x96xf32>
    %52 = tpu.matmul %49, %51, %cst_24 {dimension_numbers = #tpu.dot_dimension_numbers<[1], [0], [0], [1], [0, 0, 1, 1], [], []>} : vector<48x24xbf16>, vector<24x96xbf16>, vector<48x96xf32> -> vector<48x96xf32>
    %53 = arith.addf %50, %52 : vector<48x96xf32>
    %c0_25 = arith.constant 0 : index
    %c0_26 = arith.constant 0 : index
    %54 = vector.load %arg10[%c0_25, %c0_26] : memref<48x96xf32, #tpu.memory_space<vmem>>, vector<48x96xf32>
    tpu.vector_store %arg10[%c0_25, %c0_26], %53 {strides = array<i32>} : memref<48x96xf32, #tpu.memory_space<vmem>>, vector<48x96xf32>,
    %c1_i32 = arith.constant 1 : i32
    %55 = arith.cmpi eq, %arg1, %c1_i32 : i32
    %56 = arith.extui %55 : i1 to i32
    %c0_i32_27 = arith.constant 0 : i32
    %57 = arith.cmpi ne, %56, %c0_i32_27 : i32
    scf.if %57 {
      %c0_28 = arith.constant 0 : index
      %c0_29 = arith.constant 0 : index
      %58 = vector.load %arg10[%c0_28, %c0_29] : memref<48x96xf32, #tpu.memory_space<vmem>>, vector<48x96xf32>
      %c0_30 = arith.constant 0 : index
      %c0_31 = arith.constant 0 : index
      %c0_32 = arith.constant 0 : index
      %59 = vector.load %arg9[%c0_30, %c0_31, %c0_32] : memref<1x48x96xf32, #tpu.memory_space<vmem>>, vector<1x48x96xf32>
      %60 = vector.shape_cast %59 : vector<1x48x96xf32> to vector<48x96xf32>
      %61 = vector.shape_cast %58 : vector<48x96xf32> to vector<1x48x96xf32>
      tpu.vector_store %arg9[%c0_30, %c0_31, %c0_32], %61 {strides = array<i32>} : memref<1x48x96xf32, #tpu.memory_space<vmem>>, vector<1x48x96xf32>,
    } else {
    }
    return
  }
  func.func @transform_0(%arg0: i32, %arg1: i32) -> (i32, i32) {
    %c2_i32 = arith.constant 2 : i32
    %0 = arith.muli %arg0, %c2_i32 : i32
    %1 = arith.addi %0, %arg1 : i32
    %c0_i32 = arith.constant 0 : i32
    %c0_i32_0 = arith.constant 0 : i32
    return %1, %c0_i32 : i32, i32
  }
  func.func @transform_1(%arg0: i32, %arg1: i32) -> (i32, i32) {
    %c2_i32 = arith.constant 2 : i32
    %0 = arith.muli %arg0, %c2_i32 : i32
    %1 = arith.addi %0, %arg1 : i32
    %c0_i32 = arith.constant 0 : i32
    %c0_i32_0 = arith.constant 0 : i32
    return %1, %c0_i32 : i32, i32
  }
  func.func @transform_2(%arg0: i32, %arg1: i32) -> (i32, i32, i32) {
    %c2_i32 = arith.constant 2 : i32
    %0 = arith.muli %arg0, %c2_i32 : i32
    %1 = arith.addi %0, %arg1 : i32
    %c0_i32 = arith.constant 0 : i32
    %c0_i32_0 = arith.constant 0 : i32
    %c0_i32_1 = arith.constant 0 : i32
    return %1, %c0_i32, %c0_i32_0 : i32, i32, i32
  }
  func.func @transform_3(%arg0: i32, %arg1: i32) -> (i32, i32) {
    %c0_i32 = arith.constant 0 : i32
    %c0_i32_0 = arith.constant 0 : i32
    %c0_i32_1 = arith.constant 0 : i32
    return %c0_i32, %c0_i32_0 : i32, i32
  }
  func.func @transform_4(%arg0: i32, %arg1: i32) -> (i32, i32) {
    %c0_i32 = arith.constant 0 : i32
    %c0_i32_0 = arith.constant 0 : i32
    %c0_i32_1 = arith.constant 0 : i32
    return %c0_i32, %c0_i32_0 : i32, i32
  }
  func.func @transform_5(%arg0: i32, %arg1: i32) -> (i32, i32) {
    %c0_i32 = arith.constant 0 : i32
    %c0_i32_0 = arith.constant 0 : i32
    %c0_i32_1 = arith.constant 0 : i32
    return %c0_i32, %c0_i32_0 : i32, i32
  }
  func.func @transform_6(%arg0: i32, %arg1: i32) -> (i32, i32) {
    %c0_i32 = arith.constant 0 : i32
    %c0_i32_0 = arith.constant 0 : i32
    %c0_i32_1 = arith.constant 0 : i32
    return %c0_i32, %c0_i32_0 : i32, i32
  }
  func.func @transform_7(%arg0: i32, %arg1: i32) -> (i32, i32, i32) {
    %c0_i32 = arith.constant 0 : i32
    %c0_i32_0 = arith.constant 0 : i32
    %c0_i32_1 = arith.constant 0 : i32
    return %arg0, %c0_i32, %c0_i32_0 : i32, i32, i32
  }
}

</mosaic_0001>

<bundles_post_ra>
// kernel: tpu_custom_call.1
= control target key start
LH: loop header
LB: loop body
LE: loop exit
PB: predicated region body
PF: predicated region fallthrough
CT: control target
= control target key end

     0   :  { %12 = vsyncpa [#allocation4], 0  ;;  %s2505_s0 = inlined_call_operand.vmem [shape: f32[96,32], index: 0, kind: input, shape index: {}]   ;;  %s2506_s1 = inlined_call_operand.vmem [shape: f32[96,8], index: 1, kind: input, shape index: {}]   ;;  %s2507_s2 = inlined_call_operand.vmem [shape: s32[4,1,24], index: 2, kind: input, shape index: {}]   ;;  %s2508_s3 = inlined_call_operand.vmem [shape: f32[32,32], index: 3, kind: input, shape index: {}]   ;;  %s2509_s4 = inlined_call_operand.vmem [shape: f32[1,32], index: 4, kind: input, shape index: {}]   ;;  %s2510_s5 = inlined_call_operand.vmem [shape: f32[1,32], index: 5, kind: input, shape index: {}]   ;;  %s2511_s6 = inlined_call_operand.vmem [shape: f32[8,32], index: 6, kind: input, shape index: {}]   ;;  %s2512_s7 = inlined_call_operand.hbm [shape: f32[2,48,96], index: 7, kind: output, shape index: {}]  }
   0x1   :  { %14 = vsyncpa [#allocation4 + $0x1], 0  ;;  %s1962_s24 = smov 0   ;;  %s1964_s25 = smov 0  }
   0x2   :  { %s1966_s26 = smov 0   ;;  %s1968_s27 = smov 0  }
   0x3   :  { %s1970_s28 = smov 0   ;;  %s1972_s29 = smov 0  }
   0x4   :  { %s1974_s30 = smov 0   ;;  %s1976_s8 = smov 0  }
   0x5 LB: > { %2517 = sst [smem:[#allocation6_spill]] %s1896_s29  ;;  %s1557_s9 = sadd.s32 4294967295, %s1904_s8   ;;  %s1904_s8 = sphi %s1976_s8, %s20_s8   ;;  %s1900_s30 = sphi %s1974_s30, %s2531_s30   ;;  %s1896_s29 = sphi %s1972_s29, %s2530_s29   ;;  %s1892_s28 = sphi %s1970_s28, %s2529_s28   ;;  %s1888_s27 = sphi %s1968_s27, %s2528_s27   ;;  %s1884_s26 = sphi %s1966_s26, %s2534_s26   ;;  %s1880_s25 = sphi %s1964_s25, %s2533_s25   ;;  %s1876_s24 = sphi %s1962_s24, %s2532_s24  }
   0x6   : > { %2518 = sst [smem:[#allocation7_spill]] %s1900_s30  ;;  %s1558_s10 = sadd.s32 4294967294, %s1904_s8  }
   0x7   : > { %s29_s11 = sadd.s32 1, %s1896_s29  ;;  %s32_s12 = sadd.s32 1, %s1900_s30 }
   0x8   : > { %p30_p0 = scmp.ge.s32.totalorder %s29_s11, 2  ;;  %p223_p1 = scmp.ne.s32.totalorder %s1884_s26, %s1880_s25 }
   0x9   : > { %p224_p2 = scmp.eq.s32.totalorder %s1557_s9, 3  ;;  %p229_p4 = scmp.ne.s32.totalorder %s1880_s25, %s1876_s24 }
   0xa   : > { %s2536_s11 = smov (%p30_p0, %s29_s11), 0  ;;  %s2538_s12 = smov (!%p30_p0, %s32_s12), %s1900_s30 }
   0xb   : > { %2519 = sst [smem:[#allocation8_spill]] %s2536_s11  ;;  %p2011_p3 = por %p224_p2, %p223_p1 }
   0xc   : > { %p34_p5 = scmp.ge.s32.totalorder %s2538_s12, 2  ;;  %p230_p6 = scmp.eq.s32.totalorder %s1558_s10, 3 }
   0xd   : > { %p1567_p7 = scmp.ge.s32.totalorder %s1904_s8, 1  ;;  %p296_p8 = scmp.lt.s32.totalorder %s1904_s8, 5 }
   0xe   : > { %s2540_s12 = smov (%p34_p5, %s2538_s12), 0  ;;  %p2021_p9 = por %p230_p6, %p229_p4 }
   0xf   : > { %2521 = sst [smem:[#allocation9_spill]] %s2540_s12  ;;  %p297_p10 = pnand %p1567_p7, %p296_p8 }
  0x10   : > { %s210_s15 = ssub.s32 %s1900_s30, %s2540_s12  ;;  %s213_s16 = sadd.s32 1, %s1884_s26 }
  0x11   : > { %p211_p11 = scmp.eq.s32.totalorder %s210_s15, 0  ;;  %300 = sbr.rel (%p297_p10) target bundleno = 971 (0x3cb), region = 48 }
  0x12   : > { %s2515_s18 = sand.u32 (!%p297_p10), 1, %s1880_s25   ;;  %s1568_s19 = sshll.u32 (!%p297_p10), %s1892_s28, 1 }
  0x13   : > { %s2029_s17 = scalar_select %p211_p11, %s1884_s26, %s213_s16  }
  0x14   : > { %s1690_s20 = smul.u32 (!%p297_p10), 48, %s2515_s18  ;;  %s343_s21 = sadd.s32 (!%p297_p10), %s1888_s27, %s1568_s19 }
  0x15   : > { %s344_s22 = smul.u32 (!%p297_p10), 3, %s343_s21  ;;  %p364_p12 = scmp.lt.s32.totalorder (!%p297_p10), %s343_s21, 3 }
  0x16   : > { %s2052_s29 = scalar_lea.vmem (!%p297_p10), [#allocation3], %s1690_s20  ;;  %p1573_p0 = scmp.ne.s32.totalorder (!%p297_p10), %s1888_s27, 0 }
  0x17   : > { %p345_p13 = scmp.lt.s32.totalorder (!%p297_p10), %s344_s22, 11 }
  0x18   : > { %s2542_s21 = smov (!%p364_p12, %s343_s21), 3  ;;  %373 = sbr.rel (%p1573_p0) target bundleno = 31 (0x1f), region = 52 }
  0x19   : > { %s2544_s22 = smov (!%p345_p13, %s344_s22), 11  ;;  %s366_s10 = scalar_lea.vmem %s2507_s2, %s2542_s21  ;;  %vm374_vm0 = vcmask (!%p1573_p0), 785408   ;;  %v1906_v0 = vmov (!%p1573_p0), 0.0  }
  0x1a   : > { %s1569_s15 = sshll.u32 %s2544_s22, 3  ;;  %375 = vst.msk [vmem:[#allocation2] sm:$0xff] (!%p1573_p0), %vm374_vm0, %v1906_v0  ;;  %376 = vst.msk [vmem:[#allocation2 + $0x8] sm:$0xff] (!%p1573_p0), %vm374_vm0, %v1906_v0 }
  0x1b   : > { %s2045_s11 = scalar_lea.vmem %s2505_s0, %s1569_s15  ;;  %s2050_s19 = scalar_lea.vmem %s2506_s1, %s1569_s15  ;;  %377 = vst.msk [vmem:[#allocation2 + $0x10] sm:$0xff] (!%p1573_p0), %vm374_vm0, %v1906_v0  ;;  %378 = vst.msk [vmem:[#allocation2 + $0x18] sm:$0xff] (!%p1573_p0), %vm374_vm0, %v1906_v0 }
  0x1c   : > { %379 = vst.msk [vmem:[#allocation2 + $0x20] sm:$0xff] (!%p1573_p0), %vm374_vm0, %v1906_v0  ;;  %380 = vst.msk [vmem:[#allocation2 + $0x28] sm:$0xff] (!%p1573_p0), %vm374_vm0, %v1906_v0 }
  0x1f PF: > { %v384_v1 = vld [vmem:[%s2508_s3] sm:$0xff]  ;;  %v385_v2 = vld [vmem:[%s2508_s3 + $0x8] sm:$0xff]  ;;  %v386_v3 = vld [vmem:[%s2508_s3 + $0x10] sm:$0xff]  ;;  %v1907_v4 = vmov 0.0|0.0   ;;  %vm1908_vm1 = vmmov 0   ;;  %v1909_v7 = vmov 0.0  }
  0x20   : > { %1680 = vmatprep.subr.bf16.mxu0 %v1907_v4  ;;  %v1681_v5 = vpack.c.bf16 %v385_v2, %v384_v1  ;;  %v387_v6 = vld [vmem:[%s2508_s3 + $0x18] sm:$0xff]  ;;  %1644 = vmatprep.mubr.msk.f32.mxu0 %vm1908_vm1, %v1909_v7  ;;  %vm542_vm2 = vcmask 64512   ;;  %v541_v8 = vld [vmem:[%s2511_s6] sm:$0xff]  ;;  %v2083_v11 = vld [vmem:[%s2050_s19 + $0x8] sm:$0xff]  ;;  %vm388_vm3 = vcmask 261120   ;;  %v1910_v36 = vmov 3  }
  0x21   : > { %1653 = vmatprep.subr.mxu1 %v1909_v7  ;;  %1655 = vmatprep.mubr.msk.f32.mxu1 %vm1908_vm1, %v1909_v7  ;;  %v2076_v9 = vld [vmem:[%s2050_s19] sm:$0xff]  ;;  %v1684_v10 = vpack.c.bf16 %v387_v6, %v386_v3  ;;  %v2093_v13 = vld [vmem:[%s2050_s19 + $0x10] sm:$0xff]  ;;  %v382_v14 = vld [vmem:[%s2045_s11 + $0x8] sm:$0xff]  ;;  %v1911_v53 = vmov 683565275   ;;  %s1917_s18 = smov 32  }
  0x22   : > { %1682 = vmatpush3.bf16.msra.mxu0 %v1681_v5  ;;  %1654 = vmatpush3.msra.mxu1 %v541_v8  ;;  %v381_v12 = vld [vmem:[%s2045_s11] sm:$0xff]  ;;  %v383_v15 = vld [vmem:[%s2045_s11 + $0x10] sm:$0xff]  ;;  %v1912_v55 = vmov 2475754826   ;;  %v1913_v57 = vmov 2131351028  }
  0x23   : > { %1683 = vmatprep.subr.bf16.mxu0 %v1907_v4  ;;  %1656 = vmatmul.mubr.msk.f32.vlgmr.msra.gmra.mrb[0].mxu1 %vm542_vm2, %v2076_v9  ;;  %v1914_v59 = vmov 2102212464   ;;  %v1915_v61 = vmov 920167782   ;;  %v1916_v5 = vmov 1326507024  }
  0x24   : > { %1658 = vmatprep.mubr.msk.f32.mxu1 %vm1908_vm1, %v1909_v7  ;;  %1686 = vmatprep.subr.bf16.mxu1 %v1909_v7  ;;  %s1918_s20 = smov 64   ;;  %p1616_p1 = scmp.ne.s32.totalorder %s1888_s27, 1 }
  0x25   : > { %1791 = vset.pattern.permute.xlu1 %v1910_v36  ;;  %1790 = vset.pattern.permute.xlu0 %v1910_v36 }
  0x26   : > { %1685 = vmatpush3.bf16.msra.mxu0 %v1684_v10 }
  0x27   : > { %1659 = vmatmul.mubr.msk.f32.gmra.mrb[2].mxu1 %vm542_vm2, %v2083_v11  ;;  %1664 = vmatprep.subr.bf16.mxu0 %v1909_v7 }
  0x28   : > { %1661 = vmatprep.mubr.msk.f32.mxu1 %vm1908_vm1, %v1909_v7 }
  0x29   : > { %1645 = vmatmul.mubr.msk.f32.vlgmr.msra.gmra.mrb[0].mxu0 %vm388_vm3, %v381_v12 }
  0x2a   : > { %1647 = vmatprep.mubr.msk.f32.mxu0 %vm1908_vm1, %v1909_v7 }
  0x2b   : > { %1662 = vmatmul.mubr.msk.f32.gmra.mrb[4].mxu1 %vm542_vm2, %v2093_v13 }
  0x2c   : > { %1672 = vmatprep.mubr.msk.bf16.mxu1 %vm1908_vm1, %v1909_v7 }
  0x2d   : > { %1648 = vmatmul.mubr.msk.f32.gmra.mrb[2].mxu0 %vm388_vm3, %v382_v14 }
  0x2e   : > { %1650 = vmatprep.mubr.msk.f32.mxu0 %vm1908_vm1, %v1909_v7 }
  0x31   : > { %1651 = vmatmul.mubr.msk.f32.gmra.mrb[4].mxu0 %vm388_vm3, %v383_v15 }
  0x32   : > { %1668 = vmatprep.mubr.msk.bf16.mxu0 %vm1908_vm1, %v1909_v7 }
  0xf6   : > { %v2122_v25 = vpop.f32.mrb[0].mxu1 }
  0xf7   : > { %v632_v26 = vand.u32 2147483647, %v2122_v25  ;;  %v635_v27 = vand.u32 2139095040, %v2122_v25  ;;  %v1657_v29 = vpop.f32.mrb[1].mxu1 }
  0xf9   : > { %v636_v28 = vshrl.u32 %v635_v27, 23  ;;  %v639_v30 = vand.u32 8388607, %v632_v26 }
  0xfa   : > { %v2128_v32 = vpop.f32.mrb[2].mxu1 }
  0xfb   : > { %v1582_v31 = vadd.s32 4294967169, %v636_v28  ;;  %v735_v33 = vand.u32 2147483647, %v2128_v32  ;;  %v738_v34 = vand.u32 2139095040, %v2128_v32  ;;  %v1660_v35 = vpop.f32.mrb[3].mxu1  ;;  %v640_v39 = vor.u32 8388608, %v639_v30 }
  0xfc   : > { %v2110_v16 = vpop.f32.mrb[0].mxu0 }
  0xfd   : > { %v1646_v17 = vpop.f32.mrb[1].mxu0  ;;  %v480_v18 = vsel %vm388_vm3, %v2110_v16, 0.0  ;;  %v642_v37 = vadd.s32 1, %v1582_v31  ;;  %v739_v40 = vshrl.u32 %v738_v34, 23  ;;  %v742_v41 = vand.u32 8388607, %v735_v33 }
  0xfe   : > { %481 = vadd.xlane.f32.xlu0 %v480_v18  ;;  %v2132_v38 = vpop.f32.mrb[4].mxu1  ;;  %v2137_v48 = vshll.u32 %v640_v39, 8 }
  0xff   : > { %vm643_vm4 = vcmp.gt.s32.totalorder %v642_v37, 0  ;;  %v1663_v42 = vpop.f32.mrb[5].mxu1  ;;  %v1586_v44 = vadd.s32 4294967169, %v739_v40  ;;  %v841_v45 = vand.u32 2139095040, %v2132_v38  ;;  %v743_v49 = vor.u32 8388608, %v742_v41 }
 0x100   : > { %v2114_v19 = vpop.f32.mrb[2].mxu0  ;;  %v644_v43 = vsel %vm643_vm4, %v642_v37, 0  ;;  %v838_v51 = vand.u32 2147483647, %v2132_v38 }
 0x101   : > { %v483_v20 = vsel %vm388_vm3, %v2114_v19, 0.0  ;;  %v1649_v21 = vpop.f32.mrb[3].mxu0  ;;  %v645_v46 = vshrl.u32 %v644_v43, 5  ;;  %v646_v47 = vand.u32 31, %v644_v43  ;;  %v745_v50 = vadd.s32 1, %v1586_v44 }
 0x102   : > { %484 = vadd.xlane.f32.xlu0 %v483_v20  ;;  %v842_v63 = vshrl.u32 %v841_v45, 23  ;;  %v2154_v29 = vshll.u32 %v743_v49, 8 }
 0x103   : > { %v647_v52 = vsub.s32 32, %v646_v47  ;;  %v649_v54 = vshll.u32 %v1911_v53, %v646_v47  ;;  %v652_v56 = vshll.u32 %v1912_v55, %v646_v47  ;;  %v655_v58 = vshll.u32 %v1913_v57, %v646_v47 }
 0x104   : > { %v2118_v22 = vpop.f32.mrb[4].mxu0  ;;  %v658_v60 = vshll.u32 %v1914_v59, %v646_v47  ;;  %v661_v62 = vshll.u32 %v1915_v61, %v646_v47  ;;  %vm664_vm5 = vcmp.lt.s32.totalorder %v645_v46, 1  ;;  %vm665_vm6 = vcmp.lt.s32.totalorder %v645_v46, 2 }
 0x105   : > { %v486_v23 = vsel %vm388_vm3, %v2118_v22, 0.0  ;;  %v1652_v24 = vpop.f32.mrb[5].mxu0  ;;  %v648_v0 = vshrl.u32 %v1911_v53, %v647_v52  ;;  %v650_v1 = vshrl.u32 %v1912_v55, %v647_v52  ;;  %v653_v2 = vshrl.u32 %v1913_v57, %v647_v52 }
 0x106   : > { %487 = vadd.xlane.f32.xlu1 %v486_v23  ;;  %v656_v3 = vshrl.u32 %v1914_v59, %v647_v52  ;;  %v659_v4 = vshrl.u32 %v1915_v61, %v647_v52  ;;  %v662_v6 = vshrl.u32 %v1916_v5, %v647_v52  ;;  %vm667_vm7 = vcmp.lt.s32.totalorder %v645_v46, 4 }
 0x107   : > { %v651_v8 = vor.u32 %v650_v1, %v649_v54  ;;  %v654_v10 = vor.u32 %v653_v2, %v652_v56  ;;  %vm746_vm8 = vcmp.gt.s32.totalorder %v745_v50, 0  ;;  %vm666_vm9 = vcmp.lt.s32.totalorder %v645_v46, 3 }
 0x108   : > { %v657_v12 = vor.u32 %v656_v3, %v655_v58  ;;  %v660_v14 = vor.u32 %v659_v4, %v658_v60  ;;  %v663_v15 = vor.u32 %v662_v6, %v661_v62  ;;  %v747_v17 = vsel %vm746_vm8, %v745_v50, 0 }
 0x109   : > { %v668_v18 = vsel %vm664_vm5, %v648_v0, %v651_v8  ;;  %v672_v21 = vsel %vm664_vm5, %v651_v8, %v654_v10  ;;  %v748_v34 = vshrl.u32 %v747_v17, 5  ;;  %v749_v35 = vand.u32 31, %v747_v17 }
 0x10a   : > { %v669_v20 = vsel %vm667_vm7, %v657_v12, 2102212464  ;;  %v676_v23 = vsel %vm664_vm5, %v654_v10, %v657_v12  ;;  %v673_v27 = vsel %vm667_vm7, %v660_v14, 920167782  ;;  %v677_v28 = vsel %vm667_vm7, %v663_v15, 1326507024 }
 0x10b   : > { %v670_v24 = vsel %vm666_vm9, %v654_v10, %v669_v20  ;;  %v674_v30 = vsel %vm666_vm9, %v657_v12, %v673_v27  ;;  %v678_v31 = vsel %vm666_vm9, %v660_v14, %v677_v28  ;;  %v1590_v40 = vadd.s32 4294967169, %v842_v63 }
 0x10c   : > { %v671_v36 = vsel %vm665_vm6, %v668_v18, %v670_v24  ;;  %v675_v37 = vsel %vm665_vm6, %v672_v21, %v674_v30  ;;  %v679_v39 = vsel %vm665_vm6, %v676_v23, %v678_v31  ;;  %v750_v45 = vsub.s32 32, %v749_v35 }
 0x10d   : > { %v2160_v41 = vmul.u32.u64.low %v2137_v48, %v679_v39  ;;  %v2161_v42 = vmul.u32.u64.high %v2137_v48, %v679_v39, %v2160_v41  ;;  %v2164_v43 = vmul.u32.u64.low %v2137_v48, %v675_v37  ;;  %v2165_v44 = vmul.u32.u64.high %v2137_v48, %v675_v37, %v2164_v43 }
 0x10e   : > { %v752_v47 = vshll.u32 %v1911_v53, %v749_v35  ;;  %v755_v49 = vshll.u32 %v1912_v55, %v749_v35  ;;  %v758_v50 = vshll.u32 %v1913_v57, %v749_v35  ;;  %v687_v46 = vmul.u32 %v2137_v48, %v671_v36 }
 0x10f   : > { %v761_v52 = vshll.u32 %v1914_v59, %v749_v35  ;;  %v764_v54 = vshll.u32 %v1915_v61, %v749_v35  ;;  %vm767_vm10 = vcmp.lt.s32.totalorder %v748_v34, 1  ;;  %v751_v56 = vshrl.u32 %v1911_v53, %v750_v45 }
 0x110   : > { %v753_v58 = vshrl.u32 %v1912_v55, %v750_v45  ;;  %v756_v60 = vshrl.u32 %v1913_v57, %v750_v45  ;;  %v759_v62 = vshrl.u32 %v1914_v59, %v750_v45  ;;  %vm689_vm11 = vc.u32 %v2161_v42, %v2164_v43 }
 0x111   : > { %v690_v63 = vadd.s32 1, %v2165_v44  ;;  %v762_v48 = vshrl.u32 %v1915_v61, %v750_v45  ;;  %vm768_vm12 = vcmp.lt.s32.totalorder %v748_v34, 2  ;;  %v765_v3 = vshrl.u32 %v1916_v5, %v750_v45 }
 0x112   : > { %v754_v0 = vor.u32 %v753_v58, %v752_v47  ;;  %v757_v1 = vor.u32 %v756_v60, %v755_v49  ;;  %v760_v2 = vor.u32 %v759_v62, %v758_v50  ;;  %vm769_vm13 = vcmp.lt.s32.totalorder %v748_v34, 3 }
 0x113   : > { %v691_v4 = vsel %vm689_vm11, %v690_v63, %v2165_v44  ;;  %v763_v6 = vor.u32 %v762_v48, %v761_v52  ;;  %vm770_vm14 = vcmp.lt.s32.totalorder %v748_v34, 4  ;;  %v766_v10 = vor.u32 %v765_v3, %v764_v54 }
 0x114   : > { %v692_v8 = vadd.s32 %v691_v4, %v687_v46  ;;  %v771_v12 = vsel %vm767_vm10, %v751_v56, %v754_v0  ;;  %v772_v14 = vsel %vm770_vm14, %v760_v2, 2102212464  ;;  %v775_v17 = vsel %vm767_vm10, %v754_v0, %v757_v1 }
 0x115   : > { %v773_v15 = vsel %vm769_vm13, %v757_v1, %v772_v14  ;;  %v776_v18 = vsel %vm770_vm14, %v763_v6, 920167782  ;;  %v779_v20 = vsel %vm767_vm10, %v757_v1, %v760_v2  ;;  %v780_v24 = vsel %vm770_vm14, %v766_v10, 1326507024 }
 0x116   : > { %v693_v21 = vadd.s32 536870912, %v692_v8  ;;  %v777_v23 = vsel %vm769_vm13, %v760_v2, %v776_v18  ;;  %v774_v27 = vsel %vm768_vm12, %v771_v12, %v773_v15  ;;  %v781_v30 = vsel %vm769_vm13, %v763_v6, %v780_v24 }
 0x117   : > { %v778_v28 = vsel %vm768_vm12, %v775_v17, %v777_v23  ;;  %v848_v31 = vadd.s32 1, %v1590_v40  ;;  %v782_v36 = vsel %vm768_vm12, %v779_v20, %v781_v30  ;;  %v845_v45 = vand.u32 8388607, %v838_v51 }
 0x118   : > { %v2189_v35 = vshrl.u32 %v693_v21, 30  ;;  %v2193_v37 = vmul.u32.u64.low %v2154_v29, %v778_v28  ;;  %v2194_v39 = vmul.u32.u64.high %v2154_v29, %v778_v28, %v2193_v37  ;;  %v790_v49 = vmul.u32 %v2154_v29, %v774_v27 }
 0x119   : > { %v2198_v41 = vmul.u32.u64.low %v2154_v29, %v782_v36  ;;  %v2199_v44 = vmul.u32.u64.high %v2154_v29, %v782_v36, %v2198_v41  ;;  %vm849_vm15 = vcmp.gt.s32.totalorder %v848_v31, 0  ;;  %v846_v52 = vor.u32 8388608, %v845_v45 }
 0x11a   : > { %v695_v47 = vshll.u32 %v2189_v35, 30  ;;  %v850_v40 = vsel %vm849_vm15, %v848_v31, 0  ;;  %v793_v46 = vadd.s32 1, %v2194_v39  ;;  %vm634_vm10 = vcmp.lt.s32.totalorder %v2122_v25, 0 }
 0x11b   : > { %v852_v34 = vand.u32 31, %v850_v40  ;;  %vm792_vm0 = vc.u32 %v2199_v44, %v2193_v37  ;;  %v851_v62 = vshrl.u32 %v850_v40, 5  ;;  %v886_v23 = vshll.u32 %v846_v52, 8 }
 0x11c   : > { %v696_v50 = vsub.s32 %v692_v8, %v695_v47  ;;  %v794_v60 = vsel %vm792_vm0, %v793_v46, %v2194_v39  ;;  %vm2251_vm11 = vcmp.le.f32.partialorder %v632_v26, 0.7853982  ;;  %vm737_vm12 = vcmp.lt.s32.totalorder %v2128_v32, 0 }
 0x11d   : > { %v853_v54 = vsub.s32 32, %v852_v34  ;;  %v855_v56 = vshll.u32 %v1911_v53, %v852_v34  ;;  %v858_v63 = vshll.u32 %v1912_v55, %v852_v34  ;;  %v795_v48 = vadd.s32 %v794_v60, %v790_v49 }
 0x11e   : > { %v698_v58 = vsub.s32 0, %v696_v50  ;;  %v861_v1 = vshll.u32 %v1913_v57, %v852_v34  ;;  %v864_v4 = vshll.u32 %v1914_v59, %v852_v34  ;;  %v867_v14 = vshll.u32 %v1915_v61, %v852_v34 }
 0x11f   : > { %v856_v29 = vshrl.u32 %v1912_v55, %v853_v54  ;;  %v859_v0 = vshrl.u32 %v1913_v57, %v853_v54  ;;  %v862_v3 = vshrl.u32 %v1914_v59, %v853_v54  ;;  %v865_v6 = vshrl.u32 %v1915_v61, %v853_v54 }
 0x120   : > { %v1583_v2 = vmin.u32 %v698_v58, %v696_v50  ;;  %v796_v8 = vadd.s32 536870912, %v795_v48  ;;  %v854_v10 = vshrl.u32 %v1911_v53, %v853_v54  ;;  %v868_v18 = vshrl.u32 %v1916_v5, %v853_v54 }
 0x121   : > { %v857_v12 = vor.u32 %v856_v29, %v855_v56  ;;  %v860_v17 = vor.u32 %v859_v0, %v858_v63  ;;  %v866_v55 = vor.u32 %v865_v6, %v864_v4  ;;  %v688_v57 = vadd.s32 %v2164_v43, %v2161_v42 }
 0x122   : > { %v700_v15 = vclz %v1583_v2  ;;  %v2222_v20 = vshrl.u32 %v796_v8, 30  ;;  %v863_v21 = vor.u32 %v862_v3, %v861_v1  ;;  %vm870_vm2 = vcmp.lt.s32.totalorder %v851_v62, 1 }
 0x123   : > { %vm871_vm4 = vcmp.lt.s32.totalorder %v851_v62, 2  ;;  %vm873_vm5 = vcmp.lt.s32.totalorder %v851_v62, 4  ;;  %v869_v24 = vor.u32 %v868_v18, %v867_v14  ;;  %vm872_vm6 = vcmp.lt.s32.totalorder %v851_v62, 3 }
 0x124   : > { %v1584_v59 = vadd.s32 4294967294, %v700_v15  ;;  %v798_v53 = vshll.u32 %v2222_v20, 30  ;;  %v875_v61 = vsel %vm873_vm5, %v863_v21, 2102212464  ;;  %v874_v5 = vsel %vm870_vm2, %v854_v10, %v857_v12 }
 0x125   : > { %v878_v27 = vsel %vm870_vm2, %v857_v12, %v860_v17  ;;  %v879_v42 = vsel %vm873_vm5, %v866_v55, 920167782  ;;  %v876_v30 = vsel %vm872_vm6, %v860_v17, %v875_v61  ;;  %v882_v31 = vsel %vm870_vm2, %v860_v17, %v863_v21 }
 0x126   : > { %vm1585_vm7 = vcmp.lt.s32.totalorder %v1584_v59, 0  ;;  %v799_v28 = vsub.s32 %v795_v48, %v798_v53  ;;  %v880_v45 = vsel %vm872_vm6, %v863_v21, %v879_v42  ;;  %v883_v49 = vsel %vm873_vm5, %v869_v24, 1326507024 }
 0x127   : > { %v703_v43 = vsel %vm1585_vm7, 0, %v1584_v59  ;;  %v881_v40 = vsel %vm871_vm4, %v878_v27, %v880_v45  ;;  %v877_v52 = vsel %vm871_vm4, %v874_v5, %v876_v30  ;;  %v884_v54 = vsel %vm872_vm6, %v866_v55, %v883_v49 }
 0x128   : > { %v704_v36 = vsub.s32 32, %v703_v43  ;;  %v705_v39 = vshll.u32 %v696_v50, %v703_v43  ;;  %v708_v41 = vsub.s32 4294967266, %v703_v43  ;;  %v801_v47 = vsub.s32 0, %v799_v28 }
 0x129   : > { %v885_v58 = vsel %vm871_vm4, %v882_v31, %v884_v54  ;;  %v2237_v60 = vmul.u32.u64.low %v886_v23, %v881_v40  ;;  %v2238_v63 = vmul.u32.u64.high %v886_v23, %v881_v40, %v2237_v60  ;;  %v893_v4 = vmul.u32 %v886_v23, %v877_v52 }
 0x12a   : > { %v706_v34 = vshrl.u32 %v688_v57, %v704_v36  ;;  %v709_v46 = vadd.s32 127, %v708_v41  ;;  %v1587_v56 = vmin.u32 %v801_v47, %v799_v28  ;;  %v791_v62 = vadd.s32 %v2193_v37, %v2199_v44 }
 0x12b   : > { %v2240_v29 = vmul.u32.u64.low %v886_v23, %v885_v58  ;;  %v2241_v0 = vmul.u32.u64.high %v886_v23, %v885_v58, %v2240_v29  ;;  %v896_v8 = vadd.s32 1, %v2238_v63  ;;  %vm2270_vm13 = vcmp.le.f32.partialorder %v735_v33, 0.7853982 }
 0x12c   : > { %v707_v50 = vor.u32 %v706_v34, %v705_v39  ;;  %v710_v48 = vshll.u32 %v709_v46, 23  ;;  %v803_v1 = vclz %v1587_v56  ;;  %v821_v46 = vsub.s32 4, %v2222_v20 }
 0x12d   : > { %vm895_vm8 = vc.u32 %v2241_v0, %v2237_v60  ;;  %vm724_vm4 = vweird.f32 %v2122_v25 }
 0x12e   : > { %v711_v2 = vor.u32 4788187, %v710_v48  ;;  %v714_v3 = vcvt.s32.f32 %v707_v50  ;;  %v1588_v6 = vadd.s32 4294967294, %v803_v1  ;;  %v897_v12 = vsel %vm895_vm8, %v896_v8, %v2238_v63 }
 0x12f   : > { %v898_v17 = vadd.s32 %v897_v12, %v893_v4  ;;  %v894_v63 = vadd.s32 %v2237_v60, %v2241_v0  ;;  %v822_v29 = vsel %vm737_vm12, %v821_v46, %v2222_v20  ;;  %vm827_vm8 = vweird.f32 %v2128_v32 }
 0x130   : > { %v712_v10 = vand.u32 2147483647, %v711_v2  ;;  %vm1589_vm9 = vcmp.lt.s32.totalorder %v1588_v6, 0 }
 0x131   : > { %v806_v15 = vsel %vm1589_vm9, 0, %v1588_v6  ;;  %v899_v23 = vadd.s32 536870912, %v898_v17  ;;  %vm840_vm9 = vcmp.lt.s32.totalorder %v2132_v38, 0 }
 0x132   : > { %v715_v14 = vmul.f32 %v714_v3, %v712_v10  ;;  %v807_v55 = vsub.s32 32, %v806_v15  ;;  %v808_v18 = vshll.u32 %v799_v28, %v806_v15  ;;  %v811_v57 = vsub.s32 4294967266, %v806_v15 }
 0x133   : > { %v2257_v24 = vshrl.u32 %v899_v23, 30  ;;  %v718_v28 = vsub.s32 4, %v2189_v35 }
 0x134   : > { %v716_v59 = vxor.u32 2147483648, %v715_v14  ;;  %v809_v37 = vshrl.u32 %v791_v62, %v807_v55  ;;  %v812_v44 = vadd.s32 127, %v811_v57  ;;  %v2308_v62 = vsel %vm2270_vm13, 0, %v822_v29 }
 0x135   : > { %v901_v26 = vshll.u32 %v2257_v24, 30  ;;  %v719_v41 = vsel %vm634_vm10, %v718_v28, %v2189_v35  ;;  %v828_v15 = vand.u32 3, %v2308_v62 }
 0x136   : > { %v717_v53 = vsel %vm634_vm10, %v716_v59, %v715_v14  ;;  %v810_v5 = vor.u32 %v809_v37, %v808_v18  ;;  %v813_v27 = vshll.u32 %v812_v44, 23  ;;  %v2279_v52 = vsel %vm2251_vm11, 0, %v719_v41 }
 0x137   : > { %v720_v61 = vsel %vm2251_vm11, %v2122_v25, %v717_v53  ;;  %v902_v30 = vsub.s32 %v898_v17, %v901_v26  ;;  %v725_v56 = vand.u32 3, %v2279_v52  ;;  %vm833_vm5 = vcmp.eq.s32.totalorder %v828_v15, 2 }
 0x138   : > { %1792 = vcosq.f32 %v720_v61  ;;  %v814_v42 = vor.u32 4788187, %v813_v27  ;;  %v817_v43 = vcvt.s32.f32 %v810_v5  ;;  %vm830_vm6 = vcmp.eq.s32.totalorder %v828_v15, 0 }
 0x139   : > { %1794 = vsinq.f32 %v720_v61  ;;  %v904_v36 = vsub.s32 0, %v902_v30  ;;  %vm727_vm15 = vcmp.eq.s32.totalorder %v725_v56, 0  ;;  %vm726_vm0 = vcmp.lt.s32.totalorder %v725_v56, 2 }
 0x13a   : > { %v815_v31 = vand.u32 2147483647, %v814_v42  ;;  %vm730_vm2 = vcmp.eq.s32.totalorder %v725_v56, 2  ;;  %vm829_vm7 = vcmp.lt.s32.totalorder %v828_v15, 2  ;;  %vm839_vm10 = vcmp.le.f32.partialorder %v838_v51, 0.7853982 }
 0x13b   : > { %v1591_v45 = vmin.u32 %v904_v36, %v902_v30  ;;  %v924_v42 = vsub.s32 4, %v2257_v24 }
 0x13c   : > { %v818_v39 = vmul.f32 %v817_v43, %v815_v31 }
 0x13d   : > { %v906_v49 = vclz %v1591_v45  ;;  %v925_v28 = vsel %vm840_vm9, %v924_v42, %v2257_v24 }
 0x13e   : > { %v819_v40 = vxor.u32 2147483648, %v818_v39 }
 0x13f   : > { %v1592_v54 = vadd.s32 4294967294, %v906_v49 }
 0x140   : > { %v820_v34 = vsel %vm737_vm12, %v819_v40, %v818_v39 }
 0x141   : > { %v823_v33 = vsel %vm2270_vm13, %v2128_v32, %v820_v34  ;;  %vm1593_vm14 = vcmp.lt.s32.totalorder %v1592_v54, 0 }
 0x142   : > { %v2281_v35 = vpop.eup %1792  ;;  %1796 = vcosq.f32 %v823_v33  ;;  %v909_v1 = vsel %vm1593_vm14, 0, %v1592_v54  ;;  %vm930_vm14 = vweird.f32 %v2132_v38 }
 0x143   : > { %v2287_v58 = vpop.eup %1794  ;;  %v731_v50 = vxor.u32 2147483648, %v2281_v35  ;;  %1798 = vsinq.f32 %v823_v33  ;;  %v910_v2 = vsub.s32 32, %v909_v1  ;;  %v911_v3 = vshll.u32 %v902_v30, %v909_v1 }
 0x144   : > { %v728_v48 = vxor.u32 2147483648, %v2287_v58  ;;  %v914_v4 = vsub.s32 4294967266, %v909_v1  ;;  %v2334_v30 = vsel %vm839_vm10, 0, %v925_v28 }
 0x145   : > { %v732_v0 = vsel %vm730_vm2, %v731_v50, %v2287_v58  ;;  %v912_v6 = vshrl.u32 %v894_v63, %v910_v2  ;;  %v931_v31 = vand.u32 3, %v2334_v30  ;;  %v1245_v28 = vadd.s32 3, %v2334_v30 }
 0x146   : > { %v729_v60 = vsel %vm727_vm15, %v2281_v35, %v728_v48  ;;  %v915_v8 = vadd.s32 127, %v914_v4 }
 0x147   : > { %v733_v10 = vsel %vm726_vm0, %v729_v60, %v732_v0  ;;  %v913_v12 = vor.u32 %v912_v6, %v911_v3  ;;  %vm936_vm11 = vcmp.eq.s32.totalorder %v931_v31, 2  ;;  %vm933_vm12 = vcmp.eq.s32.totalorder %v931_v31, 0 }
 0x148   : > { %v2304_v20 = vsel %vm724_vm4, nan, %v733_v10  ;;  %v916_v14 = vshll.u32 %v915_v8, 23  ;;  %vm932_vm13 = vcmp.lt.s32.totalorder %v931_v31, 2 }
 0x149   : > { %v920_v55 = vcvt.s32.f32 %v913_v12  ;;  %v1037_v12 = vadd.s32 3, %v2279_v52 }
 0x14a   : > { %v917_v17 = vor.u32 4788187, %v916_v14 }
 0x14c   : > { %v2311_v18 = vpop.eup %1796  ;;  %v918_v21 = vand.u32 2147483647, %v917_v17  ;;  %v1038_v17 = vand.u32 3, %v1037_v12 }
 0x14d   : > { %v2313_v57 = vpop.eup %1798  ;;  %v834_v59 = vxor.u32 2147483648, %v2311_v18 }
 0x14e   : > { %v831_v23 = vxor.u32 2147483648, %v2313_v57  ;;  %v921_v37 = vmul.f32 %v920_v55, %v918_v21  ;;  %vm1040_vm15 = vcmp.eq.s32.totalorder %v1038_v17, 0  ;;  %vm1043_vm0 = vcmp.eq.s32.totalorder %v1038_v17, 2 }
 0x14f   : > { %v835_v44 = vsel %vm833_vm5, %v834_v59, %v2313_v57  ;;  %vm1039_vm2 = vcmp.lt.s32.totalorder %v1038_v17, 2  ;;  %v1042_v52 = vsel %vm1040_vm15, %v2281_v35, %v728_v48  ;;  %vm1359_vm15 = vcmask 1043456  }
 0x150   : > { %v832_v53 = vsel %vm830_vm6, %v2311_v18, %v831_v23  ;;  %v922_v61 = vxor.u32 2147483648, %v921_v37 }
 0x151   : > { %v836_v5 = vsel %vm829_vm7, %v832_v53, %v835_v44 }
 0x152   : > { %v2329_v27 = vsel %vm827_vm8, nan, %v836_v5  ;;  %v923_v26 = vsel %vm840_vm9, %v922_v61, %v921_v37  ;;  %v1045_v37 = vsel %vm1043_vm0, %v731_v50, %v2287_v58 }
 0x153   : > { %v926_v43 = vsel %vm839_vm10, %v2132_v38, %v923_v26  ;;  %v1046_v5 = vsel %vm1039_vm2, %v1042_v52, %v1045_v37 }
 0x154   : > { %1800 = vcosq.f32 %v926_v43  ;;  %v1047_v48 = vsel %vm724_vm4, nan, %v1046_v5 }
 0x155   : > { %1802 = vsinq.f32 %v926_v43 }
 0x15e   : > { %v2337_v51 = vpop.eup %1800 }
 0x15f   : > { %v2339_v36 = vpop.eup %1802  ;;  %v937_v39 = vxor.u32 2147483648, %v2337_v51 }
 0x160   : > { %v934_v41 = vxor.u32 2147483648, %v2339_v36 }
 0x161   : > { %v938_v24 = vsel %vm936_vm11, %v937_v39, %v2339_v36 }
 0x162   : > { %v935_v45 = vsel %vm933_vm12, %v2337_v51, %v934_v41 }
 0x163   : > { %v939_v47 = vsel %vm932_vm13, %v935_v45, %v938_v24 }
 0x164   : > { %v2352_v40 = vsel %vm930_vm14, nan, %v939_v47 }
 0x18b   : > { %v482_v49 = vpop.xlane.xlu0 %481 }
 0x18c   : > { %v490_v34 = vmul.f32 0.03125, %v482_v49  ;;  %v1246_v49 = vand.u32 3, %v1245_v28 }
 0x18e   : > { %v493_v46 = vsub.f32 %v2110_v16, %v490_v34  ;;  %vm1248_vm4 = vcmp.eq.s32.totalorder %v1246_v49, 0  ;;  %vm1251_vm9 = vcmp.eq.s32.totalorder %v1246_v49, 2  ;;  %vm1247_vm10 = vcmp.lt.s32.totalorder %v1246_v49, 2 }
 0x18f   : > { %v485_v33 = vpop.xlane.xlu0 %484 }
 0x190   : > { %v491_v54 = vmul.f32 0.03125, %v485_v33  ;;  %v496_v56 = vmul.f32 %v493_v46, %v493_v46 }
 0x192   : > { %v494_v63 = vsub.f32 %v2114_v19, %v491_v54  ;;  %v499_v29 = vsel %vm388_vm3, %v496_v56, 0.0 }
 0x193   : > { %500 = vadd.xlane.f32.xlu1 %v499_v29  ;;  %v488_v1 = vpop.xlane.xlu1 %487 }
 0x194   : > { %v492_v2 = vmul.f32 0.03125, %v488_v1  ;;  %v497_v3 = vmul.f32 %v494_v63, %v494_v63 }
 0x196   : > { %v495_v4 = vsub.f32 %v2118_v22, %v492_v2  ;;  %v502_v60 = vsel %vm388_vm3, %v497_v3, 0.0 }
 0x197   : > { %503 = vadd.xlane.f32.xlu0 %v502_v60 }
 0x198   : > { %v498_v0 = vmul.f32 %v495_v4, %v495_v4 }
 0x19a   : > { %v505_v6 = vsel %vm388_vm3, %v498_v0, 0.0 }
 0x19b   : > { %506 = vadd.xlane.f32.xlu1 %v505_v6 }
 0x1ac   : > { %1298 = vperm.xlu1 %1791, %v2083_v11   ;;  %v1141_v11 = vadd.s32 3, %v2308_v62  ;;  %v1578_v62 = vld [vmem:[%s2510_s5] ss:$0 sm:$0xff] }
 0x1ad   : > { %1294 = vperm.xlu0 %1790, %v2076_v9  }
 0x1ae   : > { %v1142_v44 = vand.u32 3, %v1141_v11 }
 0x1b0   : > { %1302 = vperm.xlu1 %1791, %v2093_v13   ;;  %v1577_v13 = vld [vmem:[%s2509_s4] ss:$0 sm:$0xff]  ;;  %vm1144_vm5 = vcmp.eq.s32.totalorder %v1142_v44, 0  ;;  %vm1147_vm6 = vcmp.eq.s32.totalorder %v1142_v44, 2  ;;  %vm1143_vm7 = vcmp.lt.s32.totalorder %v1142_v44, 2 }
 0x1b1   : > { %v1146_v24 = vsel %vm1144_vm5, %v2311_v18, %v831_v23  ;;  %v1149_v45 = vsel %vm1147_vm6, %v834_v59, %v2313_v57  ;;  %v1253_v23 = vsel %vm1251_vm9, %v937_v39, %v2339_v36  ;;  %vm1426_vm5 = vcmask 785408  }
 0x220   : > { %v501_v16 = vpop.xlane.xlu1 %500 }
 0x221   : > { %v508_v19 = vmul.f32 0.03125, %v501_v16 }
 0x223   : > { %v511_v8 = vadd.f32 1e-06, %v508_v19 }
 0x224   : > { %v504_v10 = vpop.xlane.xlu0 %503 }
 0x225   : > { %1804 = vrsqrt.f32 %v511_v8  ;;  %v509_v22 = vmul.f32 0.03125, %v504_v10 }
 0x227   : > { %v512_v14 = vadd.f32 1e-06, %v509_v22  ;;  %v1606_v22 = vld [vmem:[%s366_s10] ss:$0 sm:$0xff] }
 0x228   : > { %v507_v15 = vpop.xlane.xlu1 %506 }
 0x229   : > { %1806 = vrsqrt.f32 %v512_v14  ;;  %v510_v55 = vmul.f32 0.03125, %v507_v15 }
 0x22b   : > { %v513_v21 = vadd.f32 1e-06, %v510_v55 }
 0x22c   : > { %v1299_v1 = vpop.permute.xlu1 %1298  ;;  %v1295_v39 = vpop.permute.xlu0 %1294 }
 0x22d   : > { %1808 = vrsqrt.f32 %v513_v21 }
 0x22f   : > { %v1805_v9 = vpop.eup %1804 }
 0x230   : > { %v517_v53 = vmul.f32 %v1805_v9, %v493_v46  ;;  %v1150_v46 = vsel %vm1143_vm7, %v1146_v24, %v1149_v45  ;;  %v1303_v2 = vpop.permute.xlu1 %1302  ;;  %v1342_v24 = vld [vmem:[#allocation2 + $0x8] sm:$0xff] }
 0x231   : > { %v1151_v18 = vsel %vm827_vm8, nan, %v1150_v46  ;;  %vm1289_vm8 = vcmask 523264  }
 0x232   : > { %v526_v61 = vmul.f32 %v1577_v13, %v517_v53 }
 0x233   : > { %v1807_v26 = vpop.eup %1806 }
 0x234   : > { %v535_v42 = vadd.f32 %v1578_v62, %v526_v61  ;;  %v518_v43 = vmul.f32 %v1807_v26, %v494_v63 }
 0x236   : > { %v1256_v35 = vmul.f32 %v1047_v48, %v535_v42  ;;  %v527_v58 = vmul.f32 %v1577_v13, %v518_v43  ;;  %v941_v50 = vmul.f32 %v2304_v20, %v535_v42  ;;  %v1259_v34 = vmul.f32 %v2122_v25, %v535_v42  ;;  %v1343_v48 = vld [vmem:[#allocation2 + $0x10] sm:$0xff] }
 0x237   : > { %v1809_v31 = vpop.eup %1808  ;;  %v1250_v25 = vsel %vm1248_vm4, %v2337_v51, %v934_v41  ;;  %v1309_v51 = vlaneseq }
 0x238   : > { %1265 = vrot.lane.b32.xlu1 %v1256_v35, %s1917_s18  ;;  %v536_v30 = vadd.f32 %v1578_v62, %v527_v58  ;;  %v519_v47 = vmul.f32 %v1809_v31, %v495_v4  ;;  %v1254_v56 = vsel %vm1247_vm10, %v1250_v25, %v1253_v23  ;;  %v1341_v35 = vld [vmem:[#allocation2] sm:$0xff] }
 0x239   : > { %v1255_v63 = vsel %vm930_vm14, nan, %v1254_v56  ;;  %v1310_v60 = vshrl.u32 %v1309_v51, 7 }
 0x23a   : > { %v528_v33 = vmul.f32 %v1577_v13, %v519_v47  ;;  %v942_v20 = vmul.f32 %v2329_v27, %v536_v30  ;;  %v1257_v57 = vmul.f32 %v1151_v18, %v536_v30  ;;  %v1260_v27 = vmul.f32 %v2128_v32, %v536_v30  ;;  %v1345_v18 = vld [vmem:[#allocation2 + $0x20] sm:$0xff] }
 0x23b   : > { %v1312_v8 = vadd.s32 16, %v1310_v60  ;;  %v1313_v14 = vadd.s32 24, %v1310_v60  ;;  %v1311_v15 = vadd.s32 8, %v1310_v60  ;;  %vm1320_vm13 = vcmp.eq.s32.totalorder %v1310_v60, %v1606_v22 }
 0x23c   : > { %1277 = vrot.lane.b32.xlu1 %v1259_v34, %s1918_s20  ;;  %v537_v54 = vadd.f32 %v1578_v62, %v528_v33  ;;  %v1607_v52 = vsel %vm1320_vm13, 1.0, %v1909_v7  ;;  %v1314_v53 = vadd.s32 32, %v1310_v60  ;;  %v1315_v62 = vadd.s32 40, %v1310_v60 }
 0x23d   : > { %vm1322_vm11 = vcmp.eq.s32.totalorder %v1312_v8, %v1606_v22  ;;  %vm1323_vm12 = vcmp.eq.s32.totalorder %v1313_v14, %v1606_v22  ;;  %vm1321_vm14 = vcmp.eq.s32.totalorder %v1311_v15, %v1606_v22 }
 0x23e   : > { %v943_v59 = vmul.f32 %v2352_v40, %v537_v54  ;;  %v1258_v29 = vmul.f32 %v1255_v63, %v537_v54  ;;  %v1261_v40 = vmul.f32 %v2132_v38, %v537_v54  ;;  %v1609_v9 = vsel %vm1322_vm11, 1.0, %v1909_v7 }
 0x23f   : > { %v1610_v13 = vsel %vm1323_vm12, 1.0, %v1909_v7  ;;  %v1608_v37 = vsel %vm1321_vm14, 1.0, %v1909_v7  ;;  %vm1324_vm0 = vcmp.eq.s32.totalorder %v1314_v53, %v1606_v22  ;;  %vm1325_vm2 = vcmp.eq.s32.totalorder %v1315_v62, %v1606_v22 }
 0x240   : > { %1267 = vrot.lane.b32.xlu1 %v1257_v57, %s1917_s18  ;;  %v1339_v5 = vpack.c.bf16 %v1610_v13, %v1609_v9  ;;  %v1338_v26 = vpack.c.bf16 %v1608_v37, %v1607_v52  ;;  %v1611_v42 = vsel %vm1324_vm0, 1.0, %v1909_v7  ;;  %v1612_v43 = vsel %vm1325_vm2, 1.0, %v1909_v7 }
 0x241   : > { %v1340_v28 = vpack.c.bf16 %v1612_v43, %v1611_v42 }
 0x244   : > { %1279 = vrot.lane.b32.xlu1 %v1260_v27, %s1918_s20 }
 0x248   : > { %1269 = vrot.lane.b32.xlu1 %v1258_v29, %s1917_s18 }
 0x24c   : > { %1281 = vrot.lane.b32.xlu1 %v1261_v40, %s1918_s20 }
 0x2aa   : > { %v1266_v41 = vpop.permute.xlu1 %1265 }
 0x2ab   : > { %v1286_v32 = vsel %vm388_vm3, %v941_v50, %v1266_v41  ;;  %v1344_v50 = vld [vmem:[#allocation2 + $0x18] sm:$0xff] }
 0x2ae   : > { %v1278_v3 = vpop.permute.xlu1 %1277 }
 0x2af   : > { %v1290_v4 = vsel %vm1289_vm8, %v1286_v32, %v1278_v3 }
 0x2b0   : > { %v1305_v16 = vmul.f32 %v1295_v39, %v1290_v4 }
 0x2b2   : > { %v1268_v36 = vpop.permute.xlu1 %1267 }
 0x2b3   : > { %v1287_v0 = vsel %vm388_vm3, %v942_v20, %v1268_v36 }
 0x2b6   : > { %v1280_v6 = vpop.permute.xlu1 %1279 }
 0x2b7   : > { %v1291_v38 = vsel %vm1289_vm8, %v1287_v0, %v1280_v6 }
 0x2b8   : > { %v1306_v19 = vmul.f32 %v1299_v1, %v1291_v38 }
 0x2ba   : > { %v1347_v10 = vpack.c.bf16 %v1306_v19, %v1305_v16  ;;  %v1270_v12 = vpop.permute.xlu1 %1269 }
 0x2bb   : > { %v1288_v17 = vsel %vm388_vm3, %v943_v59, %v1270_v12  ;;  %vm1349_vm3 = vcmask 195584   ;;  %v1346_v59 = vld [vmem:[#allocation2 + $0x28] sm:$0xff] }
 0x2bc   : > { %1665 = vmatpush3.bf16.msra.mxu0 %v1347_v10  ;;  %1688 = vmatpush3.bf16.msra.mxu1 %v1347_v10 }
 0x2bd   : > { %1666 = vmatprep.subr.bf16.mxu0 %v1909_v7  ;;  %1687 = vmatprep.subr.bf16.mxu1 %v1909_v7 }
 0x2be   : > { %v1282_v55 = vpop.permute.xlu1 %1281 }
 0x2bf   : > { %v1292_v21 = vsel %vm1289_vm8, %v1288_v17, %v1282_v55 }
 0x2c0   : > { %v1307_v11 = vmul.f32 %v1303_v2, %v1292_v21 }
 0x2c2   : > { %v1348_v44 = vpack.c.bf16 %v1307_v11, %v1307_v11 }
 0x2c4   : > { %v1361_v61 = vsel %vm1359_vm15, %v1348_v44, 0 }
 0x2c5   : > { %1667 = vmatpush3.bf16.msra.mxu0 %v1361_v61  ;;  %1689 = vmatpush3.bf16.msra.mxu1 %v1361_v61 }
 0x2c8   : > { %1673 = vmatmul.mubr.msk.bf16.vlgmr.msra.gmra.mrb[8].mxu1 %vm1349_vm3, %v1339_v5  ;;  %1669 = vmatmul.mubr.msk.bf16.vlgmr.msra.gmra.mrb[8].mxu0 %vm1349_vm3, %v1338_v26 }
 0x2c9   : > { %1676 = vmatprep.mubr.msk.bf16.mxu1 %vm1908_vm1, %v1909_v7 }
 0x2d0   : > { %1677 = vmatmul.mubr.msk.bf16.gmra.mrb[12].mxu1 %vm1349_vm3, %v1340_v28 }
 0x39b   : > { %v1405_v58 = vpop.f32.mrb[8].mxu1  ;;  %v1397_v31 = vpop.f32.mrb[8].mxu0 }
 0x39c   : > { %v1422_v45 = vadd.f32 %v1405_v58, %v1343_v48  ;;  %v1674_v30 = vpop.f32.mrb[9].mxu1  ;;  %v1420_v47 = vadd.f32 %v1397_v31, %v1341_v35  ;;  %v1670_v49 = vpop.f32.mrb[9].mxu0 }
 0x39d   : > { %v1408_v34 = vpop.f32.mrb[10].mxu1  ;;  %v1400_v46 = vpop.f32.mrb[10].mxu0 }
 0x39e   : > { %1429 = vst.msk [vmem:[#allocation2 + $0x10] sm:$0xff] %vm1426_vm5, %v1422_v45  ;;  %v1423_v33 = vadd.f32 %v1408_v34, %v1344_v50  ;;  %v1675_v20 = vpop.f32.mrb[11].mxu1  ;;  %1427 = vst.msk [vmem:[#allocation2] sm:$0xff] %vm1426_vm5, %v1420_v47  ;;  %v1421_v7 = vadd.f32 %v1400_v46, %v1342_v24  ;;  %v1671_v54 = vpop.f32.mrb[11].mxu0 }
 0x3a0   : > { %1430 = vst.msk [vmem:[#allocation2 + $0x18] sm:$0xff] %vm1426_vm5, %v1423_v33  ;;  %1428 = vst.msk [vmem:[#allocation2 + $0x8] sm:$0xff] %vm1426_vm5, %v1421_v7 }
 0x3a2   : > { %1436 = sbr.rel (%p1616_p1) target bundleno = 945 (0x3b1), region = 56 }
 0x3a3   : > { %v1413_v57 = vpop.f32.mrb[12].mxu1 }
 0x3a4   : > { %v1424_v25 = vadd.f32 %v1413_v57, %v1345_v18  ;;  %v1678_v23 = vpop.f32.mrb[13].mxu1 }
 0x3a5   : > { %v1416_v27 = vpop.f32.mrb[14].mxu1  ;;  %v1437_v29 = vld [vmem:[#allocation2] sm:$0xff] (!%p1616_p1)  ;;  %v1439_v1 = vld [vmem:[#allocation2 + $0x10] sm:$0xff] (!%p1616_p1) }
 0x3a6   : > { %1431 = vst.msk [vmem:[#allocation2 + $0x20] sm:$0xff] %vm1426_vm5, %v1424_v25  ;;  %v1425_v56 = vadd.f32 %v1416_v27, %v1346_v59  ;;  %v1679_v63 = vpop.f32.mrb[15].mxu1  ;;  %1443 = vst.msk [vmem:[%s2052_s29] sm:$0xff] (!%p1616_p1), %vm1426_vm5, %v1437_v29 }
 0x3a7   : > { %v1438_v40 = vld [vmem:[#allocation2 + $0x8] sm:$0xff] (!%p1616_p1)  ;;  %1445 = vst.msk [vmem:[%s2052_s29 + $0x10] sm:$0xff] (!%p1616_p1), %vm1426_vm5, %v1439_v1  ;;  %v1440_v2 = vld [vmem:[#allocation2 + $0x18] sm:$0xff] (!%p1616_p1) }
 0x3a8   : > { %1432 = vst.msk [vmem:[#allocation2 + $0x28] sm:$0xff] %vm1426_vm5, %v1425_v56  ;;  %1444 = vst.msk [vmem:[%s2052_s29 + $0x8] sm:$0xff] (!%p1616_p1), %vm1426_vm5, %v1438_v40 }
 0x3a9   : > { %1446 = vst.msk [vmem:[%s2052_s29 + $0x18] sm:$0xff] %vm1426_vm5, %v1440_v2 }
 0x3ad   : > { %v1441_v41 = vld [vmem:[#allocation2 + $0x20] sm:$0xff] }
 0x3ae   : > { %1447 = vst.msk [vmem:[%s2052_s29 + $0x20] sm:$0xff] %vm1426_vm5, %v1441_v41 }
 0x3af   : > { %v1442_v3 = vld [vmem:[#allocation2 + $0x28] sm:$0xff] }
 0x3b0   : > { %1448 = vst.msk [vmem:[%s2052_s29 + $0x28] sm:$0xff] %vm1426_vm5, %v1442_v3 }
 0x3b1 PF: > { %s1703_s27 = smul.u32 768, %s1892_s28  ;;  %s1463_s21 = sshll.u32 %s2052_s29, 4  ;;  %s2449_s21 = int_to_ptr.vmem [resolvable:$true] %s1463_s21 }
 0x3b2   : > { %s2527_s12 = sand.u32 1, %s1880_s25   ;;  %s1810_s19 = scalar_lea.vmem %s2449_s21, 768 }
 0x3b3   : > { %s2447_s16 = scalar_lea.hbm %s2512_s7, %s1703_s27  ;;  %s2453_s11 = scalar_lea.sflag [#allocation4], %s2527_s12 }
 0x3b4   : > { %p1811_p2 = scmp.ne.s32.totalorder %s2449_s21, %s1810_s19  ;;  %s1919_s28 = smov [#allocation3]  }
 0x3b5   : > { %s1814_s29 = sshll.u32 %s1919_s28, 4  ;;  %s1815_s29 = int_to_ptr.vmem [resolvable:$false] %s1814_s29 }
 0x3b6   : > { %p1812_p4 = pnand %p1811_p2, %p2011_p3  ;;  %s1816_s22 = scalar_lea.vmem %s1815_s29, 1536 }
 0x3b7   : > { %p1817_p6 = scmp.lt.s32.totalorder %s2449_s21, %s1815_s29  ;;  %p1818_p7 = scmp.lt.s32.totalorder %s1816_s22, %s1810_s19 }
 0x3b8   : > { %p1813_p5 = pneg %p1812_p4 }
 0x3b9   : > { %p1819_p8 = por %p1818_p7, %p1817_p6 }
 0x3bb   : > { %p1820_p10 = pnand %p1819_p8, %p1813_p5 }
 0x3bd   : > { %1823 = shalt.err (!%p1820_p10)
}
 0x3be   : > { %s1824_s30 = scalar_lea.hbm %s2447_s16, 768  ;;  %s1828_s23 = scalar_lea.hbm %s2512_s7, 1536 }
 0x3bf   : > { %p1825_p11 = scmp.ne.s32.totalorder %s2447_s16, %s1824_s30  ;;  %p1829_p0 = scmp.lt.u32.totalorder %s2447_s16, %s2512_s7 }
 0x3c0   : > { %p1830_p1 = scmp.lt.u32.totalorder %s1828_s23, %s1824_s30  ;;  %p1832_p4 = scmp.lt.u32.totalorder %s1824_s30, %s2447_s16 }
 0x3c1   : > { %p1826_p12 = pnand %p1825_p11, %p2011_p3 }
 0x3c2   : > { %p1831_p2 = por %p1830_p1, %p1829_p0 }
 0x3c3   : > { %p1827_p13 = pneg %p1826_p12 }
 0x3c4   : > { %p1833_p5 = por %p1832_p4, %p1831_p2 }
 0x3c6   : > { %p1834_p6 = pnand %p1833_p5, %p1827_p13 }
 0x3c8   : > { %1837 = shalt.err (!%p1834_p6)
}
 0x3c9   : > { %s1920_s10 = smov 128   ;;  %s1921_s15 = smov 8  }
 0x3ca   : > { %1704 = dma.vmem_to_hbm [thread:$0]  (%p2011_p3), %s2449_s21, 768, %s2447_s16, %s2453_s11, %s1920_s10, %s1920_s10, %s1921_s15  }
 0x3cb PF: > { %p1710_p7 = scmp.ge.s32.totalorder %s1904_s8, 2  ;;  %s1478_s12 = sand.u32 1, %s1876_s24  }
 0x3cc   : > { %s1479_s19 = scalar_lea.sflag [#allocation4], %s1478_s12 }
 0x3cd   : > { %p1707_p8 = pnand %p1710_p7, %p2021_p9 }
 0x3cf   : > { %1871 = dma.done.wait (!%p1707_p8), %s1479_s19, 768  }
 0x3d0   : > { %1873 = vsyncadd (!%p1707_p8), %s1479_s19, 4294966528  ;;  %s20_s8 = sadd.s32 1, %s1904_s8   ;;  %s2528_s27 = sld [smem:[#allocation6_spill]] }
 0x3d1   : > { %p17_p10 = scmp.ge.s32.totalorder %s20_s8, 6   ;;  %s2529_s28 = sld [smem:[#allocation7_spill]] }
 0x3d2   : > { %s2530_s29 = sld [smem:[#allocation8_spill]]  ;;  %s2531_s30 = sld [smem:[#allocation9_spill]] }
 0x3d3   : > { %s2532_s24 = smov %s1880_s25  ;;  %s2533_s25 = smov %s1884_s26 }
 0x3d4   : > { %s2534_s26 = smov %s2029_s17  ;;  %19 = sbr.rel (!%p17_p10) target bundleno = 5 (0x5), region = 97 }
 0x3db   :  { %1484 = vsyncpa [#allocation4], 1 }
 0x3dc   :  { %1486 = vsyncpa [#allocation4 + $0x1], 1 }

</bundles_post_ra>
